<compile_context>
chip_gen: v7x
topology: tpu7x:2x2x1
jax: 0.10.0
libtpu: 0.0.40
codegen_flags: <defaults>
</compile_context>

<pallas_src>
import functools

import jax
import jax.numpy as jnp
from jax.experimental import pallas as pl
from jax.experimental.pallas import tpu as pltpu

_LANES = 128
_SUBL = 8


def _round_up(a, b):
    return ((a + b - 1) // b) * b


def _iou_partial_kernel(pred_ref, targ_ref, pt_ref, ppt_ref, *, approx_sigmoid):
    """One grid step over a (nc, r_tile, 128) lane-dense spatial tile.

    pt_ref / ppt_ref: (1, nc, 128) f32 output blocks.  Their block index only
    depends on the parallel axis, so they stay resident in VMEM across the
    "arbitrary" k axis and act as per-lane partial accumulators of
    sum(sigmoid(pred) * target) and sum(sigmoid(pred) + target).
    """
    k = pl.program_id(1)

    @pl.when(k == 0)
    def _():
        pt_ref[...] = jnp.zeros_like(pt_ref)
        ppt_ref[...] = jnp.zeros_like(ppt_ref)

    x = pred_ref[...].astype(jnp.float32)
    t = targ_ref[...].astype(jnp.float32)
    if approx_sigmoid:
        # Divide goes to the EUP slot instead of a multi-op VALU divide.
        p = pl.reciprocal(1.0 + jnp.exp(-x), approx=True)
    else:
        p = jax.nn.sigmoid(x)

    # Cheap sublane reduce per step; cross-lane reduce + divide deferred to the
    # wrapper epilogue (runs once on tiny (n_par, nc, 128) arrays).
    pt_ref[...] += jnp.sum(p * t, axis=1)[None]    # (1, nc, 128)
    ppt_ref[...] += jnp.sum(p + t, axis=1)[None]   # (1, nc, 128)


def iou_loss(pred, target, *, approx_sigmoid=False, input_tile_budget_bytes=None):
    """Pallas implementation of IOU_loss.forward.  Returns a scalar (f32).

    pred:   (N, C, H, W) logits (f32 or bf16 — bf16 is accepted directly and
            cuts its HBM traffic in half; accumulation is f32 in-kernel).
    target: (N, C, H, W) mask (f32 or bf16; bf16 is exact for 0/1 masks).
    """
    assert pred.shape == target.shape and pred.ndim == 4
    N, C, H, W = pred.shape
    nc = N * C
    S = H * W

    # ---- generation-aware VMEM budget -------------------------------------
    try:
        vmem_cap = getattr(pltpu.get_tpu_info(), "vmem_capacity_bytes", None)
    except Exception:
        vmem_cap = None
    if not vmem_cap:
        vmem_cap = 64 * 1024 * 1024          # conservative (v7x-sized) fallback
    vmem_limit = int(min(64 * 1024 * 1024, vmem_cap // 2))
    budget = (int(input_tile_budget_bytes) if input_tile_budget_bytes is not None
              else min(12 * 1024 * 1024, vmem_limit // 3))

    # ---- tiling over the flattened, lane-dense spatial axis ---------------
    R = pl.cdiv(S, _LANES)                          # number of 128-lane rows
    row_bytes = nc * _LANES * (pred.dtype.itemsize + target.dtype.itemsize)
    max_r = max(_SUBL, (budget // row_bytes) // _SUBL * _SUBL)

    n_par = 2 if R >= 2 * _SUBL else 1              # megacore split (>=8 rows each)
    rb = max(pl.cdiv(R, max_r), n_par)
    rb = _round_up(rb, n_par)
    if rb == 1:
        r_tile = R                                  # full extent: always legal
    else:
        r_tile = _round_up(pl.cdiv(R, rb), _SUBL)   # multiple of 8 sublanes
        rb = _round_up(pl.cdiv(R, r_tile), n_par)
    r_pad = rb * r_tile
    s_pad = r_pad * _LANES
    rb_inner = rb // n_par

    # ---- layout: (N, C, H, W) -> (nc, r_pad, 128) --------------------------
    pred2 = pred.reshape(nc, S)                     # free metadata reshapes
    targ2 = target.reshape(nc, S)
    if s_pad > S:
        # Only for non-tile-aligned spatial sizes.  pred pad -> -1e30 so
        # sigmoid(pad) == 0 exactly; target pad -> 0: padded elements add
        # exactly 0 to both inter and union.
        pred2 = jnp.pad(pred2, ((0, 0), (0, s_pad - S)), constant_values=-1e30)
        targ2 = jnp.pad(targ2, ((0, 0), (0, s_pad - S)), constant_values=0)
    pred3 = pred2.reshape(nc, r_pad, _LANES)
    targ3 = targ2.reshape(nc, r_pad, _LANES)

    kernel = functools.partial(_iou_partial_kernel, approx_sigmoid=approx_sigmoid)

    in_map = lambda i, k: (0, i * rb_inner + k, 0)
    out_map = lambda i, k: (i, 0, 0)

    cost = pl.CostEstimate(
        flops=int(5 * nc * s_pad),
        transcendentals=int(nc * s_pad),
        bytes_accessed=int(pred3.size * pred3.dtype.itemsize
                           + targ3.size * targ3.dtype.itemsize
                           + 2 * n_par * nc * _LANES * 4),
    )

    pt_part, ppt_part = pl.pallas_call(
        kernel,
        out_shape=(jax.ShapeDtypeStruct((n_par, nc, _LANES), jnp.float32),
                   jax.ShapeDtypeStruct((n_par, nc, _LANES), jnp.float32)),
        grid=(n_par, rb_inner),
        in_specs=[
            pl.BlockSpec((nc, r_tile, _LANES), in_map),
            pl.BlockSpec((nc, r_tile, _LANES), in_map),
        ],
        out_specs=(
            pl.BlockSpec((1, nc, _LANES), out_map),
            pl.BlockSpec((1, nc, _LANES), out_map),
        ),
        compiler_params=pltpu.CompilerParams(
            dimension_semantics=("parallel", "arbitrary"),
            vmem_limit_bytes=vmem_limit,
        ),
        cost_estimate=cost,
    )(pred3, targ3)

    # Tiny wrapper epilogue: cross-lane / cross-core reduce, divide, mean.
    inter = jnp.sum(pt_part, axis=(0, 2))           # (nc,)
    union = jnp.sum(ppt_part, axis=(0, 2)) - inter  # (nc,)
    iou = 1.0 - inter / union
    return jnp.mean(iou)


def iou_loss_ref(pred, target):
    """Pure-JAX reference mirroring the PyTorch module."""
    p = jax.nn.sigmoid(pred.astype(jnp.float32))
    t = target.astype(jnp.float32)
    inter = jnp.sum(p * t, axis=(2, 3))
    union = jnp.sum(p + t, axis=(2, 3)) - inter
    iou = 1.0 - inter / union
    return jnp.mean(iou)


if __name__ == "__main__":
    key = jax.random.PRNGKey(0)
    k1, k2, k3, k4, k5, k6 = jax.random.split(key, 6)

    # Primary check: small NCHW shape; bf16 0/1 target (exact, half the bytes).
    N, C, H, W = 2, 4, 16, 16
    pred = jax.random.normal(k1, (N, C, H, W), dtype=jnp.float32)
    target = (jax.random.uniform(k2, (N, C, H, W)) > 0.5).astype(jnp.bfloat16)
    out = jax.block_until_ready(iou_loss(pred, target))
    ref = jax.block_until_ready(iou_loss_ref(pred, target))
    assert jnp.allclose(out, ref, atol=1e-5, rtol=1e-5), (out, ref)

    # Multi-step reduction + megacore split: a tiny tile budget forces several
    # k steps per parallel slice (exercises k==0 init and += accumulation).
    N2, C2, H2, W2 = 1, 3, 64, 256
    pred2 = jax.random.normal(k3, (N2, C2, H2, W2), dtype=jnp.float32)
    target2 = (jax.random.uniform(k4, (N2, C2, H2, W2)) > 0.5).astype(jnp.float32)
    out2 = jax.block_until_ready(
        iou_loss(pred2, target2, input_tile_budget_bytes=32 * 1024))
    ref2 = jax.block_until_ready(iou_loss_ref(pred2, target2))
    assert jnp.allclose(out2, ref2, atol=1e-5, rtol=1e-5), (out2, ref2)

    # Unaligned spatial size (H*W % 128 != 0): exercises the zero-contribution
    # padding path.
    N3, C3, H3, W3 = 1, 2, 10, 24
    pred3 = jax.random.normal(k5, (N3, C3, H3, W3), dtype=jnp.float32)
    target3 = (jax.random.uniform(k6, (N3, C3, H3, W3)) > 0.5).astype(jnp.float32)
    out3 = jax.block_until_ready(iou_loss(pred3, target3))
    ref3 = jax.block_until_ready(iou_loss_ref(pred3, target3))
    assert jnp.allclose(out3, ref3, atol=1e-5, rtol=1e-5), (out3, ref3)

    print("KERNEL_OK")
</pallas_src>

<mosaic_0001>
module attributes {stable_mosaic.version = 11 : i64} {
  func.func @_iou_partial_kernel(%arg0: i32, %arg1: i32, %arg2: memref<8x2x128xf32, #tpu.memory_space<vmem>>, %arg3: memref<8x2x128xbf16, #tpu.memory_space<vmem>>, %arg4: memref<1x8x128xf32, #tpu.memory_space<vmem>>, %arg5: memref<1x8x128xf32, #tpu.memory_space<vmem>>) attributes {dimension_semantics = [#tpu.dimension_semantics<parallel>, #tpu.dimension_semantics<arbitrary>], iteration_bounds = array<i64: 1, 1>, scalar_prefetch = 0 : i64, scratch_operands = 0 : i64, tpu.core_type = #tpu.core_type<tc>, window_params = [{transform_indices = @transform_0, window_bounds = array<i64: 8, 2, 128>}, {transform_indices = @transform_1, window_bounds = array<i64: 8, 2, 128>}, {transform_indices = @transform_2, window_bounds = array<i64: 1, 8, 128>}, {transform_indices = @transform_3, window_bounds = array<i64: 1, 8, 128>}]} {
    %c0_i32 = arith.constant 0 : i32
    %0 = arith.cmpi eq, %arg1, %c0_i32 : i32
    %1 = arith.extui %0 : i1 to i32
    %c0_i32_0 = arith.constant 0 : i32
    %2 = arith.cmpi ne, %1, %c0_i32_0 : i32
    scf.if %2 {
      %cst_20 = arith.constant 0.000000e+00 : f32
      %23 = vector.broadcast %cst_20 : f32 to vector<1x8x128xf32>
      %c0_21 = arith.constant 0 : index
      %c0_22 = arith.constant 0 : index
      %c0_23 = arith.constant 0 : index
      %24 = vector.load %arg4[%c0_21, %c0_22, %c0_23] : memref<1x8x128xf32, #tpu.memory_space<vmem>>, vector<1x8x128xf32>
      tpu.vector_store %arg4[%c0_21, %c0_22, %c0_23], %23 {strides = array<i32>} : memref<1x8x128xf32, #tpu.memory_space<vmem>>, vector<1x8x128xf32>,
      %cst_24 = arith.constant 0.000000e+00 : f32
      %25 = vector.broadcast %cst_24 : f32 to vector<1x8x128xf32>
      %c0_25 = arith.constant 0 : index
      %c0_26 = arith.constant 0 : index
      %c0_27 = arith.constant 0 : index
      %26 = vector.load %arg5[%c0_25, %c0_26, %c0_27] : memref<1x8x128xf32, #tpu.memory_space<vmem>>, vector<1x8x128xf32>
      tpu.vector_store %arg5[%c0_25, %c0_26, %c0_27], %25 {strides = array<i32>} : memref<1x8x128xf32, #tpu.memory_space<vmem>>, vector<1x8x128xf32>,
    } else {
    }
    %c0 = arith.constant 0 : index
    %c0_1 = arith.constant 0 : index
    %c0_2 = arith.constant 0 : index
    %3 = vector.load %arg2[%c0, %c0_1, %c0_2] : memref<8x2x128xf32, #tpu.memory_space<vmem>>, vector<8x2x128xf32>
    %c0_3 = arith.constant 0 : index
    %c0_4 = arith.constant 0 : index
    %c0_5 = arith.constant 0 : index
    %4 = vector.load %arg3[%c0_3, %c0_4, %c0_5] : memref<8x2x128xbf16, #tpu.memory_space<vmem>>, vector<8x2x128xbf16>
    %5 = arith.extf %4 : vector<8x2x128xbf16> to vector<8x2x128xf32>
    %6 = arith.negf %3 : vector<8x2x128xf32>
    %7 = math.exp %6 : vector<8x2x128xf32>
    %cst = arith.constant 1.000000e+00 : f32
    %8 = vector.broadcast %cst : f32 to vector<8x2x128xf32>
    %9 = arith.addf %8, %7 : vector<8x2x128xf32>
    %10 = arith.divf %8, %9 : vector<8x2x128xf32>
    %c0_6 = arith.constant 0 : index
    %c0_7 = arith.constant 0 : index
    %c0_8 = arith.constant 0 : index
    %11 = vector.load %arg4[%c0_6, %c0_7, %c0_8] : memref<1x8x128xf32, #tpu.memory_space<vmem>>, vector<1x8x128xf32>
    %12 = arith.mulf %10, %5 : vector<8x2x128xf32>
    %cst_9 = arith.constant dense<0.000000e+00> : vector<8x128xf32>
    %13 = vector.multi_reduction <add>, %12, %cst_9 [1] : vector<8x2x128xf32> to vector<8x128xf32>
    %14 = vector.shape_cast %13 : vector<8x128xf32> to vector<1x8x128xf32>
    %15 = arith.addf %11, %14 : vector<1x8x128xf32>
    %c0_10 = arith.constant 0 : index
    %c0_11 = arith.constant 0 : index
    %c0_12 = arith.constant 0 : index
    %16 = vector.load %arg4[%c0_10, %c0_11, %c0_12] : memref<1x8x128xf32, #tpu.memory_space<vmem>>, vector<1x8x128xf32>
    tpu.vector_store %arg4[%c0_10, %c0_11, %c0_12], %15 {strides = array<i32>} : memref<1x8x128xf32, #tpu.memory_space<vmem>>, vector<1x8x128xf32>,
    %c0_13 = arith.constant 0 : index
    %c0_14 = arith.constant 0 : index
    %c0_15 = arith.constant 0 : index
    %17 = vector.load %arg5[%c0_13, %c0_14, %c0_15] : memref<1x8x128xf32, #tpu.memory_space<vmem>>, vector<1x8x128xf32>
    %18 = arith.addf %10, %5 : vector<8x2x128xf32>
    %cst_16 = arith.constant dense<0.000000e+00> : vector<8x128xf32>
    %19 = vector.multi_reduction <add>, %18, %cst_16 [1] : vector<8x2x128xf32> to vector<8x128xf32>
    %20 = vector.shape_cast %19 : vector<8x128xf32> to vector<1x8x128xf32>
    %21 = arith.addf %17, %20 : vector<1x8x128xf32>
    %c0_17 = arith.constant 0 : index
    %c0_18 = arith.constant 0 : index
    %c0_19 = arith.constant 0 : index
    %22 = vector.load %arg5[%c0_17, %c0_18, %c0_19] : memref<1x8x128xf32, #tpu.memory_space<vmem>>, vector<1x8x128xf32>
    tpu.vector_store %arg5[%c0_17, %c0_18, %c0_19], %21 {strides = array<i32>} : memref<1x8x128xf32, #tpu.memory_space<vmem>>, vector<1x8x128xf32>,
    return
  }
  func.func @transform_0(%arg0: i32, %arg1: i32) -> (i32, i32, i32) {
    %c1_i32 = arith.constant 1 : i32
    %0 = arith.muli %arg0, %c1_i32 : i32
    %1 = arith.addi %0, %arg1 : i32
    %c0_i32 = arith.constant 0 : i32
    %c0_i32_0 = arith.constant 0 : i32
    %c0_i32_1 = arith.constant 0 : i32
    return %c0_i32, %1, %c0_i32_0 : i32, i32, i32
  }
  func.func @transform_1(%arg0: i32, %arg1: i32) -> (i32, i32, i32) {
    %c1_i32 = arith.constant 1 : i32
    %0 = arith.muli %arg0, %c1_i32 : i32
    %1 = arith.addi %0, %arg1 : i32
    %c0_i32 = arith.constant 0 : i32
    %c0_i32_0 = arith.constant 0 : i32
    %c0_i32_1 = arith.constant 0 : i32
    return %c0_i32, %1, %c0_i32_0 : i32, i32, i32
  }
  func.func @transform_2(%arg0: i32, %arg1: i32) -> (i32, i32, i32) {
    %c0_i32 = arith.constant 0 : i32
    %c0_i32_0 = arith.constant 0 : i32
    %c0_i32_1 = arith.constant 0 : i32
    return %arg0, %c0_i32, %c0_i32_0 : i32, i32, i32
  }
  func.func @transform_3(%arg0: i32, %arg1: i32) -> (i32, i32, i32) {
    %c0_i32 = arith.constant 0 : i32
    %c0_i32_0 = arith.constant 0 : i32
    %c0_i32_1 = arith.constant 0 : i32
    return %arg0, %c0_i32, %c0_i32_0 : i32, i32, i32
  }
}

</mosaic_0001>

<bundles_post_ra>
// kernel: tpu_custom_call.1
= control target key start
LH: loop header
LB: loop body
LE: loop exit
PB: predicated region body
PF: predicated region fallthrough
CT: control target
= control target key end

     0   :  { %9 = vsyncpa [#allocation3], 0  ;;  %s621_s0 = inlined_call_operand.hbm [shape: f32[8,2,128], index: 0, kind: input, shape index: {}]   ;;  %s622_s1 = inlined_call_operand.hbm [shape: bf16[8,2,128], index: 1, kind: input, shape index: {}]   ;;  %s623_s2 = inlined_call_operand.hbm [shape: f32[1,8,128], index: 2, kind: output, shape index: {0}]   ;;  %s624_s3 = inlined_call_operand.hbm [shape: f32[1,8,128], index: 3, kind: output, shape index: {1}]  }
   0x1   :  { %10 = vsyncpa [#allocation6], 0 }
   0x2   :  { %11 = vsyncpa [#allocation4], 0 }
   0x3   :  { %12 = vsyncpa [#allocation9], 0  ;;  %s478_s12 = smov [#allocation2]   ;;  %s382_s16 = scalar_lea.hbm %s621_s0, 256 }
   0x4   :  { %s21_s13 = sshll.u32 %s478_s12, 4  ;;  %p383_p0 = scmp.ne.s32.totalorder %s621_s0, %s382_s16  ;;  %s22_s13 = int_to_ptr.vmem [resolvable:$true] %s21_s13 }
   0x5   :  { %p386_p1 = scmp.lt.u32.totalorder %s382_s16, %s621_s0 }
   0x7   :  { %p388_p2 = pnand %p386_p1, %p383_p0 }
   0x9   :  { %391 = shalt.err (!%p388_p2)
}
   0xa   :  { %s392_s21 = scalar_lea.vmem %s22_s13, 256  ;;  %p397_p4 = scmp.lt.s32.totalorder %s22_s13, %s22_s13 }
   0xb   :  { %p393_p3 = scmp.ne.s32.totalorder %s22_s13, %s392_s21  ;;  %p398_p5 = scmp.lt.s32.totalorder %s392_s21, %s392_s21 }
   0xd   :  { %p399_p6 = por %p398_p5, %p397_p4 }
   0xf   :  { %p400_p7 = pnand %p399_p6, %p393_p3 }
  0x11   :  { %403 = shalt.err (!%p400_p7)
}
  0x12   :  { %s479_s22 = smov 32   ;;  %s480_s23 = smov 2  }
  0x13   :  { %27 = dma.hbm_to_vmem [thread:$0]  %s621_s0, 256, %s22_s13, [#allocation3], %s479_s22, %s479_s22, %s480_s23  }
  0x14   :  { %s481_s26 = smov [#allocation5]   ;;  %s404_s30 = scalar_lea.hbm %s622_s1, 128 }
  0x15   :  { %s36_s27 = sshll.u32 %s481_s26, 4  ;;  %p405_p8 = scmp.ne.s32.totalorder %s622_s1, %s404_s30  ;;  %s37_s27 = int_to_ptr.vmem [resolvable:$true] %s36_s27 }
  0x16   :  { %p408_p9 = scmp.lt.u32.totalorder %s404_s30, %s622_s1 }
  0x18   :  { %p410_p10 = pnand %p408_p9, %p405_p8 }
  0x1a   :  { %413 = shalt.err (!%p410_p10)
}
  0x1b   :  { %s414_s8 = scalar_lea.vmem %s37_s27, 128  ;;  %p419_p12 = scmp.lt.s32.totalorder %s37_s27, %s37_s27 }
  0x1c   :  { %p415_p11 = scmp.ne.s32.totalorder %s37_s27, %s414_s8  ;;  %p420_p13 = scmp.lt.s32.totalorder %s414_s8, %s414_s8 }
  0x1e   :  { %p421_p0 = por %p420_p13, %p419_p12 }
  0x20   :  { %p422_p1 = pnand %p421_p0, %p415_p11 }
  0x22   :  { %425 = shalt.err (!%p422_p1)
}
  0x23   :  { %s482_s0 = smov 16   ;;  %s483_s9 = smov 1  }
  0x24   :  { %42 = dma.hbm_to_vmem [thread:$0]  %s622_s1, 128, %s37_s27, [#allocation6], %s482_s0, %s482_s0, %s483_s9  }
  0x25   :  { %470 = dma.done.wait [#allocation3], 256  }
  0x26   :  { %471 = vsyncadd [#allocation3], 4294967040 }
  0x27   :  { %472 = dma.done.wait [#allocation6], 128  }
  0x28   :  { %473 = vsyncadd [#allocation6], 4294967168  ;;  %v57_v0 = vld [vmem:[#allocation2] sm:$0x3]  ;;  %v58_v1 = vld [vmem:[#allocation2 + $0x2] sm:$0x3] }
  0x29   :  { %v59_v2 = vld [vmem:[#allocation2 + $0x4] sm:$0x3]  ;;  %v60_v3 = vld [vmem:[#allocation2 + $0x6] sm:$0x3]  ;;  %v61_v4 = vld [vmem:[#allocation2 + $0x8] sm:$0x3] }
  0x2a   :  { %v62_v5 = vld [vmem:[#allocation2 + $0xa] sm:$0x3]  ;;  %v63_v6 = vld [vmem:[#allocation2 + $0xc] sm:$0x3]  ;;  %v333_v7 = vmul.f32 -1.442695, %v57_v0 }
  0x2b   :  { %v334_v8 = vmul.f32 -1.442695, %v58_v1  ;;  %v335_v9 = vmul.f32 -1.442695, %v59_v2  ;;  %v336_v10 = vmul.f32 -1.442695, %v60_v3 }
  0x2c   :  { %v64_v11 = vld [vmem:[#allocation2 + $0xe] sm:$0x3]  ;;  %350 = vpow2.f32 %v333_v7  ;;  %v337_v12 = vmul.f32 -1.442695, %v61_v4  ;;  %v338_v13 = vmul.f32 -1.442695, %v62_v5 }
  0x2d   :  { %352 = vpow2.f32 %v334_v8  ;;  %v339_v14 = vmul.f32 -1.442695, %v63_v6  ;;  %v340_v15 = vmul.f32 -1.442695, %v64_v11  ;;  %v65_v30 = vld [vmem:[#allocation5] sm:$0x1] }
  0x2e   :  { %354 = vpow2.f32 %v335_v9  ;;  %v66_v32 = vld [vmem:[#allocation5 + $0x1] sm:$0x1]  ;;  %v67_v34 = vld [vmem:[#allocation5 + $0x2] sm:$0x1]  ;;  %v68_v35 = vld [vmem:[#allocation5 + $0x3] sm:$0x1]  ;;  %v73_v36 = vunpack.c.l.bf16 %v65_v30 }
  0x2f   :  { %356 = vpow2.f32 %v336_v10  ;;  %v69_v37 = vld [vmem:[#allocation5 + $0x4] sm:$0x1]  ;;  %v530_v38 = vld [vmem:[#allocation5 + $0x5] sm:$0x1]  ;;  %v74_v39 = vunpack.c.l.bf16 %v66_v32  ;;  %v532_v40 = vld [vmem:[#allocation5 + $0x6] sm:$0x1]  ;;  %v75_v42 = vunpack.c.l.bf16 %v67_v34  ;;  %v76_v44 = vunpack.c.l.bf16 %v68_v35 }
  0x30   :  { %358 = vpow2.f32 %v337_v12  ;;  %v534_v41 = vld [vmem:[#allocation5 + $0x7] sm:$0x1]  ;;  %vm138_vm0 = vcmask 1041408   ;;  %v77_v46 = vunpack.c.l.bf16 %v69_v37  ;;  %v78_v47 = vunpack.c.l.bf16 %v530_v38  ;;  %s484_s1 = smov [#allocation7]  }
  0x31   :  { %360 = vpow2.f32 %v338_v13  ;;  %v79_v51 = vunpack.c.l.bf16 %v532_v40  ;;  %v80_v52 = vunpack.c.l.bf16 %v534_v41  ;;  %vm203_vm1 = vcmask 1041409   ;;  %s309_s12 = sshll.u32 %s484_s1, 4  ;;  %s310_s12 = int_to_ptr.vmem [resolvable:$true] %s309_s12 }
  0x32   :  { %362 = vpow2.f32 %v339_v14  ;;  %vm205_vm2 = vcmask 1042434   ;;  %vm207_vm3 = vcmask 1043459   ;;  %vm209_vm4 = vcmask 1044484   ;;  %s426_s13 = scalar_lea.vmem %s310_s12, 128  ;;  %p431_p3 = scmp.lt.s32.totalorder %s310_s12, %s310_s12 }
  0x33   :  { %364 = vpow2.f32 %v340_v15  ;;  %vm211_vm5 = vcmask 1045509   ;;  %vm213_vm6 = vcmask 1046534   ;;  %vm215_vm7 = vcmask 1047559   ;;  %p427_p2 = scmp.ne.s32.totalorder %s310_s12, %s426_s13  ;;  %p432_p4 = scmp.lt.s32.totalorder %s426_s13, %s426_s13 }
  0x35   :  { %p433_p5 = por %p432_p4, %p431_p3 }
  0x36   :  { %v351_v16 = vpop.eup %350 }
  0x37   :  { %v353_v17 = vpop.eup %352  ;;  %v105_v18 = vadd.f32 1.0, %v351_v16  ;;  %p434_p6 = pnand %p433_p5, %p427_p2 }
  0x38   :  { %v355_v19 = vpop.eup %354  ;;  %v106_v20 = vadd.f32 1.0, %v353_v17 }
  0x39   :  { %v357_v21 = vpop.eup %356  ;;  %v107_v22 = vadd.f32 1.0, %v355_v19  ;;  %366 = vrcp.f32 %v105_v18 }
  0x3a   :  { %v359_v23 = vpop.eup %358  ;;  %v108_v24 = vadd.f32 1.0, %v357_v21  ;;  %368 = vrcp.f32 %v106_v20 }
  0x3b   :  { %v361_v25 = vpop.eup %360  ;;  %v109_v26 = vadd.f32 1.0, %v359_v23  ;;  %370 = vrcp.f32 %v107_v22 }
  0x3c   :  { %v363_v27 = vpop.eup %362  ;;  %v110_v28 = vadd.f32 1.0, %v361_v25  ;;  %372 = vrcp.f32 %v108_v24 }
  0x3d   :  { %v365_v29 = vpop.eup %364  ;;  %v111_v31 = vadd.f32 1.0, %v363_v27  ;;  %374 = vrcp.f32 %v109_v26 }
  0x3e   :  { %v112_v33 = vadd.f32 1.0, %v365_v29  ;;  %376 = vrcp.f32 %v110_v28 }
  0x3f   :  { %378 = vrcp.f32 %v111_v31 }
  0x40   :  { %380 = vrcp.f32 %v112_v33 }
  0x43   :  { %v367_v43 = vpop.eup %366 }
  0x44   :  { %v369_v45 = vpop.eup %368  ;;  %v130_v48 = vmul.f32 %v367_v43, %v73_v36  ;;  %v221_v49 = vadd.f32 %v367_v43, %v73_v36 }
  0x45   :  { %v371_v50 = vpop.eup %370  ;;  %v131_v53 = vmul.f32 %v369_v45, %v74_v39  ;;  %v539_v54 = vadd.f32 %v369_v45, %v74_v39 }
  0x46   :  { %v373_v55 = vpop.eup %372  ;;  %v132_v56 = vmul.f32 %v371_v50, %v75_v42  ;;  %v139_v57 = vsel %vm138_vm0, %v130_v48, 0.0  ;;  %v542_v58 = vadd.f32 %v371_v50, %v75_v42  ;;  %v545_v59 = vsel %vm138_vm0, %v221_v49, 0.0 }
  0x47   :  { %v375_v60 = vpop.eup %374  ;;  %v133_v61 = vmul.f32 %v373_v55, %v76_v44  ;;  %v140_v62 = vrot.slane %v139_v57, 4  ;;  %v146_v63 = vsel %vm138_vm0, %v131_v53, 0.0  ;;  %v548_v0 = vadd.f32 %v373_v55, %v76_v44 }
  0x48   :  { %v377_v1 = vpop.eup %376  ;;  %v134_v2 = vmul.f32 %v375_v60, %v77_v46  ;;  %v147_v3 = vrot.slane %v146_v63, 4  ;;  %v153_v4 = vsel %vm138_vm0, %v132_v56, 0.0  ;;  %v551_v5 = vadd.f32 %v375_v60, %v77_v46 }
  0x49   :  { %v379_v6 = vpop.eup %378  ;;  %v135_v7 = vmul.f32 %v377_v1, %v78_v47  ;;  %v141_v8 = vadd.f32 %v140_v62, %v139_v57  ;;  %v154_v9 = vrot.slane %v153_v4, 4  ;;  %v160_v10 = vsel %vm138_vm0, %v133_v61, 0.0 }
  0x4a   :  { %v381_v11 = vpop.eup %380  ;;  %v136_v12 = vmul.f32 %v379_v6, %v79_v51  ;;  %v148_v13 = vadd.f32 %v147_v3, %v146_v63  ;;  %v161_v14 = vrot.slane %v160_v10, 4  ;;  %v167_v15 = vsel %vm138_vm0, %v134_v2, 0.0 }
  0x4b   :  { %v137_v16 = vmul.f32 %v381_v11, %v80_v52  ;;  %v142_v17 = vrot.slane %v141_v8, 2  ;;  %v155_v18 = vadd.f32 %v154_v9, %v153_v4  ;;  %v168_v19 = vrot.slane %v167_v15, 4 }
  0x4c   :  { %v149_v20 = vrot.slane %v148_v13, 2  ;;  %v162_v21 = vadd.f32 %v161_v14, %v160_v10  ;;  %v174_v22 = vsel %vm138_vm0, %v135_v7, 0.0  ;;  %v181_v23 = vsel %vm138_vm0, %v136_v12, 0.0 }
  0x4d   :  { %v143_v24 = vadd.f32 %v142_v17, %v141_v8  ;;  %v156_v25 = vrot.slane %v155_v18, 2  ;;  %v169_v26 = vadd.f32 %v168_v19, %v167_v15  ;;  %v175_v27 = vrot.slane %v174_v22, 4 }
  0x4e   :  { %v150_v28 = vadd.f32 %v149_v20, %v148_v13  ;;  %v163_v29 = vrot.slane %v162_v21, 2  ;;  %v182_v30 = vrot.slane %v181_v23, 4  ;;  %v188_v31 = vsel %vm138_vm0, %v137_v16, 0.0 }
  0x4f   :  { %v144_v32 = vrot.slane %v143_v24, 1  ;;  %v157_v33 = vadd.f32 %v156_v25, %v155_v18  ;;  %v170_v34 = vrot.slane %v169_v26, 2  ;;  %v176_v35 = vadd.f32 %v175_v27, %v174_v22 }
  0x50   :  { %v151_v36 = vrot.slane %v150_v28, 1  ;;  %v164_v37 = vadd.f32 %v163_v29, %v162_v21  ;;  %v183_v39 = vadd.f32 %v182_v30, %v181_v23  ;;  %v189_v42 = vrot.slane %v188_v31, 4 }
  0x51   :  { %v145_v43 = vadd.f32 %v144_v32, %v143_v24  ;;  %v158_v44 = vrot.slane %v157_v33, 1  ;;  %v171_v45 = vadd.f32 %v170_v34, %v169_v26  ;;  %v177_v46 = vrot.slane %v176_v35, 2 }
  0x52   :  { %v152_v48 = vadd.f32 %v151_v36, %v150_v28  ;;  %v165_v49 = vrot.slane %v164_v37, 1  ;;  %v184_v50 = vrot.slane %v183_v39, 2  ;;  %v190_v53 = vadd.f32 %v189_v42, %v188_v31 }
  0x53   :  { %v159_v55 = vadd.f32 %v158_v44, %v157_v33  ;;  %v172_v56 = vrot.slane %v171_v45, 1  ;;  %v178_v57 = vadd.f32 %v177_v46, %v176_v35  ;;  %v226_v60 = vadd.f32 %v377_v1, %v78_v47 }
  0x54   :  { %v166_v61 = vadd.f32 %v165_v49, %v164_v37  ;;  %v185_v62 = vadd.f32 %v184_v50, %v183_v39  ;;  %v191_v63 = vrot.slane %v190_v53, 2  ;;  %v204_v2 = vsel %vm203_vm1, %v152_v48, %v145_v43 }
  0x55   :  { %v173_v3 = vadd.f32 %v172_v56, %v171_v45  ;;  %v179_v4 = vrot.slane %v178_v57, 1  ;;  %v206_v7 = vsel %vm205_vm2, %v159_v55, %v204_v2  ;;  %v227_v8 = vadd.f32 %v379_v6, %v79_v51 }
  0x56   :  { %v186_v9 = vrot.slane %v185_v62, 1  ;;  %v192_v10 = vadd.f32 %v191_v63, %v190_v53  ;;  %v208_v12 = vsel %vm207_vm3, %v166_v61, %v206_v7  ;;  %v228_v38 = vadd.f32 %v381_v11, %v80_v52 }
  0x57   :  { %v180_v47 = vadd.f32 %v179_v4, %v178_v57  ;;  %v210_v1 = vsel %vm209_vm4, %v173_v3, %v208_v12  ;;  %v230_v13 = vrot.slane %v545_v59, 4  ;;  %v236_v14 = vsel %vm138_vm0, %v539_v54, 0.0 }
  0x58   :  { %v187_v15 = vadd.f32 %v186_v9, %v185_v62  ;;  %v193_v16 = vrot.slane %v192_v10, 1  ;;  %v237_v17 = vrot.slane %v236_v14, 4  ;;  %v243_v40 = vsel %vm138_vm0, %v542_v58, 0.0 }
  0x59   :  { %v212_v51 = vsel %vm211_vm5, %v180_v47, %v210_v1  ;;  %v231_v6 = vadd.f32 %v230_v13, %v545_v59  ;;  %v244_v41 = vrot.slane %v243_v40, 4  ;;  %v250_v52 = vsel %vm138_vm0, %v548_v0, 0.0 }
  0x5a   :  { %v194_v11 = vadd.f32 %v193_v16, %v192_v10  ;;  %v214_v18 = vsel %vm213_vm6, %v187_v15, %v212_v51  ;;  %v238_v19 = vadd.f32 %v237_v17, %v236_v14  ;;  %v251_v20 = vrot.slane %v250_v52, 4 }
  0x5b   :  { %v232_v54 = vrot.slane %v231_v6, 2  ;;  %v245_v21 = vadd.f32 %v244_v41, %v243_v40  ;;  %v257_v58 = vsel %vm138_vm0, %v551_v5, 0.0  ;;  %v264_v22 = vsel %vm138_vm0, %v226_v60, 0.0 }
  0x5c   :  { %v216_v59 = vsel %vm215_vm7, %v194_v11, %v214_v18  ;;  %v239_v23 = vrot.slane %v238_v19, 2  ;;  %v252_v24 = vadd.f32 %v251_v20, %v250_v52  ;;  %v258_v25 = vrot.slane %v257_v58, 4 }
  0x5d   :  { %v233_v0 = vadd.f32 %v232_v54, %v231_v6  ;;  %v246_v26 = vrot.slane %v245_v21, 2  ;;  %v265_v27 = vrot.slane %v264_v22, 4  ;;  %v271_v31 = vsel %vm138_vm0, %v227_v8, 0.0  ;;  %219 = vst [vmem:[#allocation7] sm:$0xff] %v216_v59 }
  0x5e   :  { %v240_v28 = vadd.f32 %v239_v23, %v238_v19  ;;  %v253_v29 = vrot.slane %v252_v24, 2  ;;  %v259_v30 = vadd.f32 %v258_v25, %v257_v58  ;;  %v272_v34 = vrot.slane %v271_v31, 4 }
  0x5f   :  { %v234_v32 = vrot.slane %v233_v0, 1  ;;  %v247_v33 = vadd.f32 %v246_v26, %v245_v21  ;;  %v266_v5 = vadd.f32 %v265_v27, %v264_v22  ;;  %v278_v39 = vsel %vm138_vm0, %v228_v38, 0.0 }
  0x60   :  { %v241_v35 = vrot.slane %v240_v28, 1  ;;  %v254_v36 = vadd.f32 %v253_v29, %v252_v24  ;;  %v260_v37 = vrot.slane %v259_v30, 2 }
  0x61   :  { %437 = shalt.err (!%p434_p6)
}
  0x62   :  { %s438_s16 = scalar_lea.hbm %s623_s2, 128 }
  0x63   :  { %p439_p7 = scmp.ne.s32.totalorder %s623_s2, %s438_s16  ;;  %p442_p8 = scmp.lt.u32.totalorder %s438_s16, %s623_s2 }
  0x65   :  { %p444_p9 = pnand %p442_p8, %p439_p7 }
  0x67   :  { %447 = shalt.err (!%p444_p9)
}
  0x68   :  { %312 = dma.vmem_to_hbm [thread:$0]  %s310_s12, 128, %s623_s2, [#allocation4]   ;;  %v235_v42 = vadd.f32 %v234_v32, %v233_v0  ;;  %v248_v43 = vrot.slane %v247_v33, 1  ;;  %v267_v44 = vrot.slane %v266_v5, 2  ;;  %v273_v45 = vadd.f32 %v272_v34, %v271_v31 }
  0x69   :  { %v242_v46 = vadd.f32 %v241_v35, %v240_v28  ;;  %v255_v48 = vrot.slane %v254_v36, 1  ;;  %v261_v49 = vadd.f32 %v260_v37, %v259_v30  ;;  %v279_v50 = vrot.slane %v278_v39, 4  ;;  %s485_s2 = smov [#allocation8]  }
  0x6a   :  { %v249_v53 = vadd.f32 %v248_v43, %v247_v33  ;;  %v268_v55 = vadd.f32 %v267_v44, %v266_v5  ;;  %v274_v56 = vrot.slane %v273_v45, 2  ;;  %s319_s23 = sshll.u32 %s485_s2, 4  ;;  %s320_s23 = int_to_ptr.vmem [resolvable:$true] %s319_s23 }
  0x6b   :  { %v256_v57 = vadd.f32 %v255_v48, %v254_v36  ;;  %v262_v60 = vrot.slane %v261_v49, 1  ;;  %v280_v61 = vadd.f32 %v279_v50, %v278_v39  ;;  %v293_v62 = vsel %vm203_vm1, %v242_v46, %v235_v42  ;;  %s448_s24 = scalar_lea.vmem %s320_s23, 128  ;;  %p453_p11 = scmp.lt.s32.totalorder %s320_s23, %s320_s23 }
  0x6c   :  { %v269_v63 = vrot.slane %v268_v55, 1  ;;  %v275_v2 = vadd.f32 %v274_v56, %v273_v45  ;;  %v294_v3 = vsel %vm205_vm2, %v249_v53, %v293_v62  ;;  %p449_p10 = scmp.ne.s32.totalorder %s320_s23, %s448_s24  ;;  %p454_p12 = scmp.lt.s32.totalorder %s448_s24, %s448_s24 }
  0x6d   :  { %v263_v4 = vadd.f32 %v262_v60, %v261_v49  ;;  %v281_v7 = vrot.slane %v280_v61, 2  ;;  %v295_v8 = vsel %vm207_vm3, %v256_v57, %v294_v3 }
  0x6e   :  { %v270_v9 = vadd.f32 %v269_v63, %v268_v55  ;;  %v276_v10 = vrot.slane %v275_v2, 1  ;;  %p455_p13 = por %p454_p12, %p453_p11 }
  0x6f   :  { %v282_v12 = vadd.f32 %v281_v7, %v280_v61  ;;  %v296_v38 = vsel %vm209_vm4, %v263_v4, %v295_v8 }
  0x70   :  { %v277_v47 = vadd.f32 %v276_v10, %v275_v2  ;;  %v297_v1 = vsel %vm211_vm5, %v270_v9, %v296_v38  ;;  %p456_p0 = pnand %p455_p13, %p449_p10 }
  0x71   :  { %v283_v13 = vrot.slane %v282_v12, 1 }
  0x72   :  { %v298_v14 = vsel %vm213_vm6, %v277_v47, %v297_v1 }
  0x73   :  { %v284_v15 = vadd.f32 %v283_v13, %v282_v12 }
  0x75   :  { %v299_v16 = vsel %vm215_vm7, %v284_v15, %v298_v14 }
  0x76   :  { %302 = vst [vmem:[#allocation8] sm:$0xff] %v299_v16 }
  0x77   :  { %459 = shalt.err (!%p456_p0)
}
  0x78   :  { %s460_s27 = scalar_lea.hbm %s624_s3, 128 }
  0x79   :  { %p461_p1 = scmp.ne.s32.totalorder %s624_s3, %s460_s27  ;;  %p464_p2 = scmp.lt.u32.totalorder %s460_s27, %s624_s3 }
  0x7b   :  { %p466_p3 = pnand %p464_p2, %p461_p1 }
  0x7d   :  { %469 = shalt.err (!%p466_p3)
}
  0x7e   :  { %322 = dma.vmem_to_hbm [thread:$0]  %s320_s23, 128, %s624_s3, [#allocation9]  }
  0x7f   :  { %474 = dma.done.wait [#allocation4], 128  }
  0x80   :  { %475 = vsyncadd [#allocation4], 4294967168 }
  0x81   :  { %476 = dma.done.wait [#allocation9], 128  }
  0x82   :  { %477 = vsyncadd [#allocation9], 4294967168 }
  0x83   :  { %329 = vsyncpa [#allocation3], 1 }
  0x84   :  { %330 = vsyncpa [#allocation6], 1 }
  0x85   :  { %331 = vsyncpa [#allocation4], 1 }
  0x86   :  { %332 = vsyncpa [#allocation9], 1 }

</bundles_post_ra>
